<compile_context>
chip_gen: v7x
topology: tpu7x:2x2x1
jax: 0.10.0
libtpu: 0.0.40
codegen_flags: <defaults>
</compile_context>

<pallas_src>
import jax
import jax.numpy as jnp
from jax.experimental import pallas as pl
from jax.experimental.pallas import tpu as pltpu


def _round_up(n, m):
    return ((n + m - 1) // m) * m


def fnn_kernel(x_ref, w1_ref, b1_ref, w2_ref, b2_ref, w3_ref, b3_ref,
               w4_ref, b4_ref, o_ref):
    # x_ref: (2, TB)   activations transposed -> batch on lanes
    # wN_ref: (out, in) transposed weights, bN_ref: (out, 1)
    x = x_ref[...]
    w1 = w1_ref[...]                                        # (64, 2)

    # Layer 1: K=2 contraction -> two VPU broadcast-FMAs (skip the MXU).
    h = w1[:, 0:1] * x[0:1, :] + w1[:, 1:2] * x[1:2, :] + b1_ref[...]
    h = jnp.tanh(h)

    # Layer 2: 64x64 MXU matmul, f32 accumulation, then ReLU.
    h = jnp.dot(w2_ref[...], h, preferred_element_type=jnp.float32) + b2_ref[...]
    h = jnp.maximum(h, 0.0)

    # Layer 3: 64x64 MXU matmul, then tanh.
    h = jnp.dot(w3_ref[...], h, preferred_element_type=jnp.float32) + b3_ref[...]
    h = jnp.tanh(h)

    # Layer 4: (1, 64) @ (64, TB) -> lane-dense (1, TB) output block.
    out = jnp.dot(w4_ref[...], h, preferred_element_type=jnp.float32) + b4_ref[...]
    o_ref[...] = out.astype(o_ref.dtype)


def fnn_forward(x, params, *, batch_tile=1024):
    """x: (B, 2) f32. params: (w1,b1,...,w4,b4) with w (in,out), b (1,out)."""
    B, Fin = x.shape
    assert Fin == 2
    w1, b1, w2, b2, w3, b3, w4, b4 = params

    # --- tile selection ---------------------------------------------------
    # Big, lane-aligned (multiple of 128) batch tiles amortize the ~600-cycle
    # per-grid-step overhead; VMEM footprint is tiny (~20 KiB weights +
    # TB*~0.3 KiB activations), so we clamp only to the (rounded-up) batch.
    tile = min(batch_tile, _round_up(max(B, 1), 128))
    # Keep >=2 parallel grid steps for large batches so both v7x TensorCores
    # get work (harmless no-op on v5e/v6e).
    if B > 256 and pl.cdiv(B, tile) < 2:
        tile = _round_up(pl.cdiv(B, 2), 128)
    Bp = _round_up(B, tile)

    # --- lane-dense transposed layout (layout plumbing, done once) ---------
    x_t = x.T                                   # (2, B)
    if Bp != B:
        x_t = jnp.pad(x_t, ((0, 0), (0, Bp - B)))
    w1t, w2t, w3t, w4t = w1.T, w2.T, w3.T, w4.T           # (out, in)
    b1t, b2t, b3t, b4t = b1.T, b2.T, b3.T, b4.T           # (out, 1)

    grid = (Bp // tile,)

    def const_spec(arr):
        # Full-array block, same block every grid step (stays resident in VMEM).
        return pl.BlockSpec(arr.shape, lambda i: (0,) * arr.ndim)

    flops = 2 * B * (2 * 64 + 64 * 64 + 64 * 64 + 64)
    param_bytes = 4 * sum(int(a.size) for a in (w1, b1, w2, b2, w3, b3, w4, b4))
    cost = pl.CostEstimate(
        flops=flops,
        transcendentals=2 * 64 * B,                     # two tanh layers
        bytes_accessed=4 * (B * 2 + B * 1) + param_bytes,
    )

    out_t = pl.pallas_call(
        fnn_kernel,
        out_shape=jax.ShapeDtypeStruct((1, Bp), x.dtype),
        grid_spec=pltpu.PrefetchScalarGridSpec(
            num_scalar_prefetch=0,
            grid=grid,
            in_specs=[
                pl.BlockSpec((2, tile), lambda i: (0, i)),   # x (features, batch)
                const_spec(w1t), const_spec(b1t),
                const_spec(w2t), const_spec(b2t),
                const_spec(w3t), const_spec(b3t),
                const_spec(w4t), const_spec(b4t),
            ],
            out_specs=pl.BlockSpec((1, tile), lambda i: (0, i)),
        ),
        compiler_params=pltpu.CompilerParams(
            dimension_semantics=("parallel",)),
        cost_estimate=cost,
    )(x_t, w1t, b1t, w2t, b2t, w3t, b3t, w4t, b4t)

    # Back to the PyTorch (B, 1) convention; drop padded columns.
    return out_t[:, :B].T


def init_params(key):
    """Deterministic init mirroring PyTorch nn.Linear default U(-1/sqrt(fan_in), +)."""
    def linear(key, fan_in, fan_out):
        kw, kb = jax.random.split(key)
        bound = 1.0 / jnp.sqrt(fan_in)
        # stored as (in, out) so the reference does x @ W (== x @ W_torch.T)
        w = jax.random.uniform(kw, (fan_in, fan_out), jnp.float32, -bound, bound)
        b = jax.random.uniform(kb, (1, fan_out), jnp.float32, -bound, bound)
        return w, b

    k1, k2, k3, k4 = jax.random.split(key, 4)
    w1, b1 = linear(k1, 2, 64)
    w2, b2 = linear(k2, 64, 64)
    w3, b3 = linear(k3, 64, 64)
    w4, b4 = linear(k4, 64, 1)
    return (w1, b1, w2, b2, w3, b3, w4, b4)


def fnn_reference(x, params):
    w1, b1, w2, b2, w3, b3, w4, b4 = params
    h = jnp.tanh(x @ w1 + b1)
    h = jnp.maximum(h @ w2 + b2, 0.0)
    h = jnp.tanh(h @ w3 + b3)
    return h @ w4 + b4


if __name__ == "__main__":
    key = jax.random.PRNGKey(0)
    kx, kp = jax.random.split(key)
    batch = 256
    x = jax.random.normal(kx, (batch, 2), jnp.float32)
    params = init_params(kp)

    out = jax.block_until_ready(fnn_forward(x, params))
    ref = fnn_reference(x, params)

    assert out.shape == (batch, 1), out.shape
    err = float(jnp.max(jnp.abs(out - ref)))
    assert jnp.allclose(out, ref, atol=1e-4, rtol=1e-4), err
    print("KERNEL_OK")
</pallas_src>

<mosaic_0001>
module attributes {stable_mosaic.version = 11 : i64} {
  func.func @fnn_kernel(%arg0: i32, %arg1: memref<2x256xf32, #tpu.memory_space<vmem>>, %arg2: memref<64x2xf32, #tpu.memory_space<vmem>>, %arg3: memref<64x1xf32, #tpu.memory_space<vmem>>, %arg4: memref<64x64xf32, #tpu.memory_space<vmem>>, %arg5: memref<64x1xf32, #tpu.memory_space<vmem>>, %arg6: memref<64x64xf32, #tpu.memory_space<vmem>>, %arg7: memref<64x1xf32, #tpu.memory_space<vmem>>, %arg8: memref<1x64xf32, #tpu.memory_space<vmem>>, %arg9: memref<1x1xf32, #tpu.memory_space<vmem>>, %arg10: memref<1x256xf32, #tpu.memory_space<vmem>>) attributes {dimension_semantics = [#tpu.dimension_semantics<parallel>], iteration_bounds = array<i64: 1>, scalar_prefetch = 0 : i64, scratch_operands = 0 : i64, tpu.core_type = #tpu.core_type<tc>, window_params = [{transform_indices = @transform_0, window_bounds = array<i64: 2, 256>}, {pipeline_mode = #tpu.pipeline_mode<synchronous>, transform_indices = @transform_1, window_bounds = array<i64: 64, 2>}, {pipeline_mode = #tpu.pipeline_mode<synchronous>, transform_indices = @transform_2, window_bounds = array<i64: 64, 1>}, {pipeline_mode = #tpu.pipeline_mode<synchronous>, transform_indices = @transform_3, window_bounds = array<i64: 64, 64>}, {pipeline_mode = #tpu.pipeline_mode<synchronous>, transform_indices = @transform_4, window_bounds = array<i64: 64, 1>}, {pipeline_mode = #tpu.pipeline_mode<synchronous>, transform_indices = @transform_5, window_bounds = array<i64: 64, 64>}, {pipeline_mode = #tpu.pipeline_mode<synchronous>, transform_indices = @transform_6, window_bounds = array<i64: 64, 1>}, {pipeline_mode = #tpu.pipeline_mode<synchronous>, transform_indices = @transform_7, window_bounds = array<i64: 1, 64>}, {pipeline_mode = #tpu.pipeline_mode<synchronous>, transform_indices = @transform_8, window_bounds = array<i64: 1, 1>}, {transform_indices = @transform_9, window_bounds = array<i64: 1, 256>}]} {
    %c0 = arith.constant 0 : index
    %c0_0 = arith.constant 0 : index
    %0 = vector.load %arg1[%c0, %c0_0] : memref<2x256xf32, #tpu.memory_space<vmem>>, vector<2x256xf32>
    %c0_1 = arith.constant 0 : index
    %c0_2 = arith.constant 0 : index
    %1 = vector.load %arg2[%c0_1, %c0_2] : memref<64x2xf32, #tpu.memory_space<vmem>>, vector<64x2xf32>
    %2 = vector.extract_strided_slice %1 {offsets = [0, 0], sizes = [64, 1], strides = [1, 1]} : vector<64x2xf32> to vector<64x1xf32>
    %3 = vector.extract_strided_slice %0 {offsets = [0, 0], sizes = [1, 256], strides = [1, 1]} : vector<2x256xf32> to vector<1x256xf32>
    %4 = vector.broadcast %2 : vector<64x1xf32> to vector<64x256xf32>
    %5 = vector.broadcast %3 : vector<1x256xf32> to vector<64x256xf32>
    %6 = arith.mulf %4, %5 : vector<64x256xf32>
    %7 = vector.extract_strided_slice %1 {offsets = [0, 1], sizes = [64, 1], strides = [1, 1]} : vector<64x2xf32> to vector<64x1xf32>
    %8 = vector.extract_strided_slice %0 {offsets = [1, 0], sizes = [1, 256], strides = [1, 1]} : vector<2x256xf32> to vector<1x256xf32>
    %9 = vector.broadcast %7 : vector<64x1xf32> to vector<64x256xf32>
    %10 = vector.broadcast %8 : vector<1x256xf32> to vector<64x256xf32>
    %11 = arith.mulf %9, %10 : vector<64x256xf32>
    %12 = arith.addf %6, %11 : vector<64x256xf32>
    %c0_3 = arith.constant 0 : index
    %c0_4 = arith.constant 0 : index
    %13 = vector.load %arg3[%c0_3, %c0_4] : memref<64x1xf32, #tpu.memory_space<vmem>>, vector<64x1xf32>
    %14 = vector.broadcast %13 : vector<64x1xf32> to vector<64x256xf32>
    %15 = arith.addf %12, %14 : vector<64x256xf32>
    %16 = math.tanh %15 : vector<64x256xf32>
    %c0_5 = arith.constant 0 : index
    %c0_6 = arith.constant 0 : index
    %17 = vector.load %arg4[%c0_5, %c0_6] : memref<64x64xf32, #tpu.memory_space<vmem>>, vector<64x64xf32>
    %cst = arith.constant dense<0.000000e+00> : vector<64x256xf32>
    %18 = tpu.matmul %17, %16, %cst {dimension_numbers = #tpu.dot_dimension_numbers<[1], [0], [0], [1], [0, 0, 1, 1], [], []>} : vector<64x64xf32>, vector<64x256xf32>, vector<64x256xf32> -> vector<64x256xf32>
    %c0_7 = arith.constant 0 : index
    %c0_8 = arith.constant 0 : index
    %19 = vector.load %arg5[%c0_7, %c0_8] : memref<64x1xf32, #tpu.memory_space<vmem>>, vector<64x1xf32>
    %20 = vector.broadcast %19 : vector<64x1xf32> to vector<64x256xf32>
    %21 = arith.addf %18, %20 : vector<64x256xf32>
    %cst_9 = arith.constant 0.000000e+00 : f32
    %22 = vector.broadcast %cst_9 : f32 to vector<64x256xf32>
    %23 = arith.maximumf %21, %22 : vector<64x256xf32>
    %c0_10 = arith.constant 0 : index
    %c0_11 = arith.constant 0 : index
    %24 = vector.load %arg6[%c0_10, %c0_11] : memref<64x64xf32, #tpu.memory_space<vmem>>, vector<64x64xf32>
    %cst_12 = arith.constant dense<0.000000e+00> : vector<64x256xf32>
    %25 = tpu.matmul %24, %23, %cst_12 {dimension_numbers = #tpu.dot_dimension_numbers<[1], [0], [0], [1], [0, 0, 1, 1], [], []>} : vector<64x64xf32>, vector<64x256xf32>, vector<64x256xf32> -> vector<64x256xf32>
    %c0_13 = arith.constant 0 : index
    %c0_14 = arith.constant 0 : index
    %26 = vector.load %arg7[%c0_13, %c0_14] : memref<64x1xf32, #tpu.memory_space<vmem>>, vector<64x1xf32>
    %27 = vector.broadcast %26 : vector<64x1xf32> to vector<64x256xf32>
    %28 = arith.addf %25, %27 : vector<64x256xf32>
    %29 = math.tanh %28 : vector<64x256xf32>
    %c0_15 = arith.constant 0 : index
    %c0_16 = arith.constant 0 : index
    %30 = vector.load %arg8[%c0_15, %c0_16] : memref<1x64xf32, #tpu.memory_space<vmem>>, vector<1x64xf32>
    %cst_17 = arith.constant dense<0.000000e+00> : vector<1x256xf32>
    %31 = tpu.matmul %30, %29, %cst_17 {dimension_numbers = #tpu.dot_dimension_numbers<[1], [0], [0], [1], [0, 0, 1, 1], [], []>} : vector<1x64xf32>, vector<64x256xf32>, vector<1x256xf32> -> vector<1x256xf32>
    %c0_18 = arith.constant 0 : index
    %c0_19 = arith.constant 0 : index
    %32 = vector.load %arg9[%c0_18, %c0_19] : memref<1x1xf32, #tpu.memory_space<vmem>>, vector<1x1xf32>
    %33 = vector.broadcast %32 : vector<1x1xf32> to vector<1x256xf32>
    %34 = arith.addf %31, %33 : vector<1x256xf32>
    %c0_20 = arith.constant 0 : index
    %c0_21 = arith.constant 0 : index
    %35 = vector.load %arg10[%c0_20, %c0_21] : memref<1x256xf32, #tpu.memory_space<vmem>>, vector<1x256xf32>
    tpu.vector_store %arg10[%c0_20, %c0_21], %34 {strides = array<i32>} : memref<1x256xf32, #tpu.memory_space<vmem>>, vector<1x256xf32>,
    return
  }
  func.func @transform_0(%arg0: i32) -> (i32, i32) {
    %c0_i32 = arith.constant 0 : i32
    %c0_i32_0 = arith.constant 0 : i32
    return %c0_i32, %arg0 : i32, i32
  }
  func.func @transform_1(%arg0: i32) -> (i32, i32) {
    %c0_i32 = arith.constant 0 : i32
    %c0_i32_0 = arith.constant 0 : i32
    %c0_i32_1 = arith.constant 0 : i32
    return %c0_i32, %c0_i32_0 : i32, i32
  }
  func.func @transform_2(%arg0: i32) -> (i32, i32) {
    %c0_i32 = arith.constant 0 : i32
    %c0_i32_0 = arith.constant 0 : i32
    %c0_i32_1 = arith.constant 0 : i32
    return %c0_i32, %c0_i32_0 : i32, i32
  }
  func.func @transform_3(%arg0: i32) -> (i32, i32) {
    %c0_i32 = arith.constant 0 : i32
    %c0_i32_0 = arith.constant 0 : i32
    %c0_i32_1 = arith.constant 0 : i32
    return %c0_i32, %c0_i32_0 : i32, i32
  }
  func.func @transform_4(%arg0: i32) -> (i32, i32) {
    %c0_i32 = arith.constant 0 : i32
    %c0_i32_0 = arith.constant 0 : i32
    %c0_i32_1 = arith.constant 0 : i32
    return %c0_i32, %c0_i32_0 : i32, i32
  }
  func.func @transform_5(%arg0: i32) -> (i32, i32) {
    %c0_i32 = arith.constant 0 : i32
    %c0_i32_0 = arith.constant 0 : i32
    %c0_i32_1 = arith.constant 0 : i32
    return %c0_i32, %c0_i32_0 : i32, i32
  }
  func.func @transform_6(%arg0: i32) -> (i32, i32) {
    %c0_i32 = arith.constant 0 : i32
    %c0_i32_0 = arith.constant 0 : i32
    %c0_i32_1 = arith.constant 0 : i32
    return %c0_i32, %c0_i32_0 : i32, i32
  }
  func.func @transform_7(%arg0: i32) -> (i32, i32) {
    %c0_i32 = arith.constant 0 : i32
    %c0_i32_0 = arith.constant 0 : i32
    %c0_i32_1 = arith.constant 0 : i32
    return %c0_i32, %c0_i32_0 : i32, i32
  }
  func.func @transform_8(%arg0: i32) -> (i32, i32) {
    %c0_i32 = arith.constant 0 : i32
    %c0_i32_0 = arith.constant 0 : i32
    %c0_i32_1 = arith.constant 0 : i32
    return %c0_i32, %c0_i32_0 : i32, i32
  }
  func.func @transform_9(%arg0: i32) -> (i32, i32) {
    %c0_i32 = arith.constant 0 : i32
    %c0_i32_0 = arith.constant 0 : i32
    return %c0_i32, %arg0 : i32, i32
  }
}

</mosaic_0001>

<bundles_post_ra>
// kernel: tpu_custom_call.1
= control target key start
LH: loop header
LB: loop body
LE: loop exit
PB: predicated region body
PF: predicated region fallthrough
CT: control target
= control target key end

     0   :  { %s1307_s0 = inlined_call_operand.vmem [shape: f32[2,256], index: 0, kind: input, shape index: {}]   ;;  %s1308_s1 = inlined_call_operand.vmem [shape: f32[64,2], index: 1, kind: input, shape index: {}]   ;;  %s1309_s2 = inlined_call_operand.vmem [shape: f32[64,1], index: 2, kind: input, shape index: {}]   ;;  %s1310_s3 = inlined_call_operand.vmem [shape: f32[64,64], index: 3, kind: input, shape index: {}]   ;;  %s1311_s4 = inlined_call_operand.vmem [shape: f32[64,1], index: 4, kind: input, shape index: {}]   ;;  %s1312_s5 = inlined_call_operand.vmem [shape: f32[64,64], index: 5, kind: input, shape index: {}]   ;;  %s1313_s6 = inlined_call_operand.vmem [shape: f32[64,1], index: 6, kind: input, shape index: {}]   ;;  %s1314_s7 = inlined_call_operand.vmem [shape: f32[1,64], index: 7, kind: input, shape index: {}]   ;;  %s1315_s8 = inlined_call_operand.<no memory space> [shape: f32[1,1], index: 8, kind: input, shape index: {}]   ;;  %s1316_s9 = inlined_call_operand.hbm [shape: f32[1,256], index: 9, kind: output, shape index: {}]  }
   0x1   :  { %v14_v0 = vstv %s1315_s8 }
   0x2   :  { %15 = vst [vmem:[#allocation2] sm:$0x1] %v14_v0 }
   0x3   :  { %v38_v1 = vld [vmem:[%s1308_s1 + $0x10] sm:$0xff]  ;;  %v36_v2 = vld [vmem:[%s1308_s1] sm:$0xff]  ;;  %v990_v3 = vmov 1   ;;  %v37_v5 = vld [vmem:[%s1308_s1 + $0x8] sm:$0xff]  ;;  %v991_v8 = vmov 0  }
   0x4   :  { %894 = vset.pattern.permute.xlu0 %v990_v3  ;;  %892 = vset.pattern.permute.xlu1 %v990_v3  ;;  %v40_v4 = vld [vmem:[%s1308_s1 + $0x20] sm:$0xff]  ;;  %v42_v6 = vld [vmem:[%s1308_s1 + $0x30] sm:$0xff]  ;;  %v39_v7 = vld [vmem:[%s1308_s1 + $0x18] sm:$0xff] }
   0x5   :  { %128 = vperm.xlu0 %894, %v38_v1   ;;  %120 = vperm.xlu1 %892, %v36_v2  }
   0x9   :  { %136 = vperm.xlu0 %894, %v40_v4   ;;  %124 = vperm.xlu1 %892, %v37_v5  }
   0xd   :  { %144 = vperm.xlu0 %894, %v42_v6   ;;  %893 = vset.pattern.permute.xlu1 %v991_v8 }
   0xe   :  { %61 = vperm.xlu1 %893, %v39_v7  }
   0xf   :  { %16 = vsyncpa [#allocation4], 0  ;;  %v201_v9 = vld [vmem:[%s1309_s2] sm:$0xff]  ;;  %v202_v10 = vld [vmem:[%s1309_s2 + $0x8] sm:$0xff]  ;;  %v992_v33 = vmov 0.0   ;;  %v85_v37 = vlaneseq  ;;  %vm337_vm0 = vcmask 523264  }
  0x10   :  { %v41_v11 = vld [vmem:[%s1308_s1 + $0x28] sm:$0xff]  ;;  %v204_v12 = vld [vmem:[%s1309_s2 + $0x18] sm:$0xff]  ;;  %v289_v14 = vld [vmem:[%s1311_s4] sm:$0xff]  ;;  %426 = vmatprep.mubr.f32.mxu0 %v992_v33  ;;  %635 = vmatprep.mubr.f32.mxu1 %v992_v33  ;;  %s994_s10 = smov [#allocation3]  }
  0x11   :  { %899 = vset.pattern.permute.xlu0 %v991_v8  ;;  %v206_v13 = vld [vmem:[%s1309_s2 + $0x28] sm:$0xff]  ;;  %v203_v15 = vld [vmem:[%s1309_s2 + $0x10] sm:$0xff]  ;;  %v293_v17 = vld [vmem:[%s1311_s4 + $0x20] sm:$0xff]  ;;  %v1147_v40 = vshrl.u32 %v85_v37, 7  ;;  %s814_s11 = sshll.u32 %s994_s10, 4  ;;  %vm805_vm1 = vcmp.lt.s32.totalorder %v85_v37, 256  ;;  %s815_s11 = int_to_ptr.vmem [resolvable:$true] %s814_s11 }
  0x12   :  { %46 = vperm.xlu0 %899, %v36_v2   ;;  %895 = vset.pattern.permute.xlu1 %v990_v3  ;;  %v291_v16 = vld [vmem:[%s1311_s4 + $0x10] sm:$0xff]  ;;  %v43_v18 = vld [vmem:[%s1308_s1 + $0x38] sm:$0xff]  ;;  %v499_v20 = vld [vmem:[%s1313_s6] sm:$0xff]  ;;  %p971_p1 = scmp.lt.s32.totalorder %s815_s11, %s815_s11 }
  0x13   :  { %132 = vperm.xlu1 %895, %v39_v7   ;;  %v295_v19 = vld [vmem:[%s1311_s4 + $0x30] sm:$0xff]  ;;  %v205_v21 = vld [vmem:[%s1309_s2 + $0x20] sm:$0xff]  ;;  %v208_v25 = vld [vmem:[%s1309_s2 + $0x38] sm:$0xff]  ;;  %v153_v43 = vsub.s32 1, %v1147_v40  ;;  %v1153_v44 = vsub.s32 0, %v1147_v40  ;;  %v157_v45 = vsub.s32 3, %v1147_v40 }
  0x14   :  { %v501_v22 = vld [vmem:[%s1313_s6 + $0x10] sm:$0xff]  ;;  %v503_v24 = vld [vmem:[%s1313_s6 + $0x20] sm:$0xff]  ;;  %v290_v27 = vld [vmem:[%s1311_s4 + $0x8] sm:$0xff]  ;;  %v91_v47 = vsub.s32 2, %v1147_v40 }
  0x15   :  { %v207_v23 = vld [vmem:[%s1309_s2 + $0x30] sm:$0xff]  ;;  %v701_v28 = vld [vmem:[#allocation2] sm:$0x1]  ;;  %v292_v29 = vld [vmem:[%s1311_s4 + $0x18] sm:$0xff] }
  0x16   :  { %51 = vperm.xlu0 %899, %v37_v5   ;;  %v505_v26 = vld [vmem:[%s1313_s6 + $0x30] sm:$0xff]  ;;  %v294_v30 = vld [vmem:[%s1311_s4 + $0x28] sm:$0xff]  ;;  %v296_v31 = vld [vmem:[%s1311_s4 + $0x38] sm:$0xff] }
  0x17   :  { %896 = vset.pattern.permute.xlu1 %v991_v8  ;;  %v500_v32 = vld [vmem:[%s1313_s6 + $0x8] sm:$0xff]  ;;  %v502_v34 = vld [vmem:[%s1313_s6 + $0x18] sm:$0xff]  ;;  %v35_v46 = vld [vmem:[%s1307_s0] sm:$0xf] }
  0x18   :  { %211 = vperm.xlu1 %896, %v201_v9   ;;  %v504_v35 = vld [vmem:[%s1313_s6 + $0x28] sm:$0xff]  ;;  %v506_v36 = vld [vmem:[%s1313_s6 + $0x38] sm:$0xff]  ;;  %v154_v50 = vrot.slane %v35_v46, %v153_v43  ;;  %v88_v51 = vrot.slane %v35_v46, %v1153_v44  ;;  %v158_v52 = vrot.slane %v35_v46, %v157_v45  ;;  %v92_v53 = vrot.slane %v35_v46, %v91_v47 }
  0x1a   :  { %56 = vperm.xlu0 %899, %v38_v1   ;;  %v1163_v55 = vrot.slane %v154_v50, %v153_v43  ;;  %v1166_v56 = vrot.slane %v88_v51, %v1153_v44  ;;  %v1168_v58 = vrot.slane %v158_v52, %v153_v43  ;;  %v1171_v59 = vrot.slane %v92_v53, %v1153_v44 }
  0x1c   :  { %66 = vperm.xlu1 %896, %v40_v4  }
  0x1e   :  { %216 = vperm.xlu0 %899, %v202_v10  }
  0x20   :  { %71 = vperm.xlu1 %896, %v41_v11  }
  0x22   :  { %226 = vperm.xlu0 %899, %v204_v12  }
  0x24   :  { %897 = vset.pattern.permute.xlu1 %v990_v3 }
  0x25   :  { %140 = vperm.xlu1 %897, %v41_v11  }
  0x26   :  { %236 = vperm.xlu0 %899, %v206_v13  }
  0x29   :  { %898 = vset.pattern.permute.xlu1 %v991_v8 }
  0x2a   :  { %299 = vperm.xlu0 %899, %v289_v14   ;;  %221 = vperm.xlu1 %898, %v203_v15  }
  0x2e   :  { %309 = vperm.xlu0 %899, %v291_v16   ;;  %76 = vperm.xlu1 %898, %v42_v6  }
  0x32   :  { %319 = vperm.xlu0 %899, %v293_v17   ;;  %81 = vperm.xlu1 %898, %v43_v18  }
  0x36   :  { %329 = vperm.xlu0 %899, %v295_v19   ;;  %900 = vset.pattern.permute.xlu1 %v990_v3 }
  0x37   :  { %148 = vperm.xlu1 %900, %v43_v18  }
  0x3a   :  { %509 = vperm.xlu0 %899, %v499_v20  }
  0x3b   :  { %901 = vset.pattern.permute.xlu1 %v991_v8 }
  0x3c   :  { %231 = vperm.xlu1 %901, %v205_v21  }
  0x3e   :  { %519 = vperm.xlu0 %899, %v501_v22  }
  0x40   :  { %241 = vperm.xlu1 %901, %v207_v23  }
  0x42   :  { %529 = vperm.xlu0 %899, %v503_v24  }
  0x44   :  { %246 = vperm.xlu1 %901, %v208_v25  }
  0x46   :  { %539 = vperm.xlu0 %899, %v505_v26  }
  0x48   :  { %304 = vperm.xlu1 %901, %v290_v27  }
  0x4a   :  { %704 = vperm.xlu0 %899, %v701_v28  }
  0x4c   :  { %314 = vperm.xlu1 %901, %v292_v29  }
  0x50   :  { %324 = vperm.xlu1 %901, %v294_v30  }
  0x54   :  { %334 = vperm.xlu1 %901, %v296_v31  }
  0x58   :  { %514 = vperm.xlu1 %901, %v500_v32  }
  0x5c   :  { %524 = vperm.xlu1 %901, %v502_v34  }
  0x60   :  { %534 = vperm.xlu1 %901, %v504_v35  }
  0x64   :  { %544 = vperm.xlu1 %901, %v506_v36  }
  0x84   :  { %v121_v38 = vpop.permute.xlu1 %120  ;;  %v129_v39 = vpop.permute.xlu0 %128 }
  0x85   :  { %v169_v63 = vmul.f32 %v1163_v55, %v121_v38  ;;  %v170_v0 = vmul.f32 %v1168_v58, %v121_v38  ;;  %v173_v20 = vmul.f32 %v1163_v55, %v129_v39  ;;  %v174_v22 = vmul.f32 %v1168_v58, %v129_v39 }
  0x88   :  { %v125_v41 = vpop.permute.xlu1 %124  ;;  %v1149_v42 = vpop.permute.xlu0 %136 }
  0x89   :  { %v171_v7 = vmul.f32 %v1163_v55, %v125_v41  ;;  %v172_v8 = vmul.f32 %v1168_v58, %v125_v41 }
  0x8c   :  { %v1160_v48 = vpop.permute.xlu0 %144 }
  0x8d   :  { %v62_v49 = vpop.permute.xlu1 %61 }
  0x8e   :  { %v109_v21 = vmul.f32 %v1166_v56, %v62_v49  ;;  %v110_v23 = vmul.f32 %v1171_v59, %v62_v49 }
  0x91   :  { %v47_v54 = vpop.permute.xlu0 %46 }
  0x92   :  { %v133_v57 = vpop.permute.xlu1 %132  ;;  %v103_v60 = vmul.f32 %v1166_v56, %v47_v54  ;;  %v104_v61 = vmul.f32 %v1171_v59, %v47_v54 }
  0x93   :  { %v175_v18 = vmul.f32 %v1163_v55, %v133_v57  ;;  %v176_v19 = vmul.f32 %v1168_v58, %v133_v57 }
  0x94   :  { %v185_v4 = vadd.f32 %v169_v63, %v103_v60  ;;  %v186_v5 = vadd.f32 %v170_v0, %v104_v61  ;;  %v177_v63 = vmul.f32 %v1163_v55, %v1149_v42  ;;  %v178_v0 = vmul.f32 %v1168_v58, %v1149_v42 }
  0x95   :  { %v52_v62 = vpop.permute.xlu0 %51  ;;  %v191_v28 = vadd.f32 %v175_v18, %v109_v21  ;;  %v192_v29 = vadd.f32 %v176_v19, %v110_v23  ;;  %v182_v18 = vmul.f32 %v1168_v58, %v1160_v48 }
  0x96   :  { %v105_v2 = vmul.f32 %v1166_v56, %v52_v62  ;;  %v106_v3 = vmul.f32 %v1171_v59, %v52_v62 }
  0x97   :  { %v212_v1 = vpop.permute.xlu1 %211 }
  0x98   :  { %v249_v9 = vadd.f32 %v212_v1, %v185_v4  ;;  %v250_v10 = vadd.f32 %v212_v1, %v186_v5  ;;  %v187_v12 = vadd.f32 %v171_v7, %v105_v2  ;;  %v188_v13 = vadd.f32 %v172_v8, %v106_v3 }
  0x99   :  { %v57_v6 = vpop.permute.xlu0 %56 }
  0x9a   :  { %902 = vtanh.f32 %v249_v9  ;;  %v107_v24 = vmul.f32 %v1166_v56, %v57_v6  ;;  %v108_v25 = vmul.f32 %v1171_v59, %v57_v6 }
  0x9b   :  { %v67_v11 = vpop.permute.xlu1 %66  ;;  %904 = vtanh.f32 %v250_v10 }
  0x9c   :  { %v189_v34 = vadd.f32 %v173_v20, %v107_v24  ;;  %v190_v35 = vadd.f32 %v174_v22, %v108_v25  ;;  %v111_v1 = vmul.f32 %v1166_v56, %v67_v11  ;;  %v112_v2 = vmul.f32 %v1171_v59, %v67_v11 }
  0x9d   :  { %v217_v14 = vpop.permute.xlu0 %216 }
  0x9e   :  { %v251_v15 = vadd.f32 %v217_v14, %v187_v12  ;;  %v252_v16 = vadd.f32 %v217_v14, %v188_v13  ;;  %v193_v13 = vadd.f32 %v177_v63, %v111_v1  ;;  %v194_v14 = vadd.f32 %v178_v0, %v112_v2 }
  0x9f   :  { %v72_v17 = vpop.permute.xlu1 %71 }
  0xa0   :  { %906 = vtanh.f32 %v251_v15  ;;  %v113_v53 = vmul.f32 %v1166_v56, %v72_v17  ;;  %v114_v54 = vmul.f32 %v1171_v59, %v72_v17 }
  0xa1   :  { %908 = vtanh.f32 %v252_v16  ;;  %v227_v26 = vpop.permute.xlu0 %226  ;;  %v181_v16 = vmul.f32 %v1163_v55, %v1160_v48 }
  0xa2   :  { %v255_v30 = vadd.f32 %v227_v26, %v191_v28  ;;  %v256_v32 = vadd.f32 %v227_v26, %v192_v29 }
  0xa4   :  { %v141_v27 = vpop.permute.xlu1 %140  ;;  %v903_v31 = vpop.eup %902  ;;  %910 = vtanh.f32 %v255_v30 }
  0xa5   :  { %v905_v36 = vpop.eup %904  ;;  %912 = vtanh.f32 %v256_v32  ;;  %v179_v50 = vmul.f32 %v1163_v55, %v141_v27  ;;  %v180_v51 = vmul.f32 %v1168_v58, %v141_v27  ;;  %v237_v5 = vpop.permute.xlu0 %236 }
  0xa7   :  { %v195_v57 = vadd.f32 %v179_v50, %v113_v53  ;;  %v196_v61 = vadd.f32 %v180_v51, %v114_v54  ;;  %v285_v50 = vld [vmem:[%s1310_s3 + $0x20] sm:$0xff]  ;;  %v286_v51 = vld [vmem:[%s1310_s3 + $0x28] sm:$0xff]  ;;  %v288_v53 = vld [vmem:[%s1310_s3 + $0x38] sm:$0xff] }
  0xa9   :  { %v222_v38 = vpop.permute.xlu1 %221  ;;  %v259_v7 = vadd.f32 %v237_v5, %v195_v57  ;;  %v260_v9 = vadd.f32 %v237_v5, %v196_v61 }
  0xaa   :  { %v907_v41 = vpop.eup %906  ;;  %v253_v43 = vadd.f32 %v222_v38, %v189_v34  ;;  %v254_v39 = vadd.f32 %v222_v38, %v190_v35 }
  0xab   :  { %v909_v45 = vpop.eup %908  ;;  %v841_v46 = vpack.c.bf16 %v907_v41, %v903_v31 }
  0xac   :  { %v839_v47 = vpack.c.bf16 %v909_v45, %v905_v36  ;;  %914 = vtanh.f32 %v253_v43  ;;  %v281_v45 = vld [vmem:[%s1310_s3] sm:$0xff] }
  0xad   :  { %v77_v49 = vpop.permute.xlu1 %76  ;;  %916 = vtanh.f32 %v254_v39 }
  0xae   :  { %840 = vmatprep.subr.bf16.mxu0 %v839_v47  ;;  %v911_v60 = vpop.eup %910  ;;  %v115_v12 = vmul.f32 %v1166_v56, %v77_v49  ;;  %v116_v15 = vmul.f32 %v1171_v59, %v77_v49  ;;  %918 = vtanh.f32 %v259_v7  ;;  %v283_v47 = vld [vmem:[%s1310_s3 + $0x10] sm:$0xff]  ;;  %v284_v49 = vld [vmem:[%s1310_s3 + $0x18] sm:$0xff] }
  0xaf   :  { %842 = vmatpush1.bf16.msra.mxu0 %v841_v46  ;;  %v913_v62 = vpop.eup %912  ;;  %920 = vtanh.f32 %v260_v9  ;;  %v282_v46 = vld [vmem:[%s1310_s3 + $0x8] sm:$0xff] }
  0xb0   :  { %v197_v21 = vadd.f32 %v181_v16, %v115_v12  ;;  %v198_v23 = vadd.f32 %v182_v18, %v116_v15 }
  0xb1   :  { %v82_v52 = vpop.permute.xlu1 %81 }
  0xb2   :  { %v117_v24 = vmul.f32 %v1166_v56, %v82_v52  ;;  %v118_v25 = vmul.f32 %v1171_v59, %v82_v52  ;;  %v287_v52 = vld [vmem:[%s1310_s3 + $0x30] sm:$0xff] }
  0xb6   :  { %v149_v3 = vpop.permute.xlu1 %148  ;;  %v915_v4 = vpop.eup %914 }
  0xb7   :  { %v917_v6 = vpop.eup %916  ;;  %v845_v8 = vpack.c.bf16 %v911_v60, %v915_v4  ;;  %v183_v19 = vmul.f32 %v1163_v55, %v149_v3  ;;  %v184_v20 = vmul.f32 %v1168_v58, %v149_v3  ;;  %v300_v60 = vpop.permute.xlu0 %299 }
  0xb8   :  { %v843_v10 = vpack.c.bf16 %v913_v62, %v917_v6  ;;  %v919_v55 = vpop.eup %918 }
  0xb9   :  { %v199_v28 = vadd.f32 %v183_v19, %v117_v24  ;;  %v200_v29 = vadd.f32 %v184_v20, %v118_v25  ;;  %v921_v58 = vpop.eup %920 }
  0xba   :  { %844 = vmatprep.subr.bf16.mxu0 %v843_v10 }
  0xbb   :  { %v232_v42 = vpop.permute.xlu1 %231  ;;  %846 = vmatpush1.bf16.msra.mxu0 %v845_v8  ;;  %v310_v12 = vpop.permute.xlu0 %309 }
  0xbc   :  { %v257_v11 = vadd.f32 %v232_v42, %v193_v13  ;;  %v258_v17 = vadd.f32 %v232_v42, %v194_v14 }
  0xbe   :  { %922 = vtanh.f32 %v257_v11 }
  0xbf   :  { %924 = vtanh.f32 %v258_v17  ;;  %v242_v22 = vpop.permute.xlu1 %241 }
  0xc0   :  { %v261_v26 = vadd.f32 %v242_v22, %v197_v21  ;;  %v262_v27 = vadd.f32 %v242_v22, %v198_v23 }
  0xc2   :  { %926 = vtanh.f32 %v261_v26  ;;  %v320_v26 = vpop.permute.xlu0 %319 }
  0xc3   :  { %v247_v30 = vpop.permute.xlu1 %246  ;;  %928 = vtanh.f32 %v262_v27 }
  0xc4   :  { %v263_v48 = vadd.f32 %v247_v30, %v199_v28  ;;  %v264_v31 = vadd.f32 %v247_v30, %v200_v29 }
  0xc6   :  { %930 = vtanh.f32 %v263_v48 }
  0xc7   :  { %932 = vtanh.f32 %v264_v31  ;;  %v305_v62 = vpop.permute.xlu1 %304 }
  0xc8   :  { %v923_v32 = vpop.eup %922 }
  0xc9   :  { %v925_v34 = vpop.eup %924  ;;  %v849_v35 = vpack.c.bf16 %v919_v55, %v923_v32 }
  0xca   :  { %v847_v36 = vpack.c.bf16 %v921_v58, %v925_v34 }
  0xcb   :  { %v315_v15 = vpop.permute.xlu1 %314 }
  0xcc   :  { %848 = vmatprep.subr.bf16.mxu0 %v847_v36  ;;  %v927_v56 = vpop.eup %926 }
  0xcd   :  { %850 = vmatpush1.bf16.msra.mxu0 %v849_v35  ;;  %v929_v59 = vpop.eup %928 }
  0xcf   :  { %v325_v29 = vpop.permute.xlu1 %324 }
  0xd0   :  { %v931_v38 = vpop.eup %930 }
  0xd1   :  { %v933_v41 = vpop.eup %932  ;;  %v853_v43 = vpack.c.bf16 %v931_v38, %v927_v56 }
  0xd2   :  { %v851_v39 = vpack.c.bf16 %v933_v41, %v929_v59  ;;  %v330_v41 = vpop.permute.xlu0 %329 }
  0xd4   :  { %852 = vmatprep.subr.bf16.mxu0 %v851_v39 }
  0xd5   :  { %854 = vmatpush1.bf16.msra.mxu0 %v853_v43 }
  0xd8   :  { %822 = vmatmul.mubr.msk.f32.vlgmr.msra.gmra.mrb[0].mxu0 %vm337_vm0, %v281_v45  ;;  %v335_v45 = vpop.permute.xlu1 %334 }
  0xd9   :  { %432 = vmatprep.mubr.f32.mxu0 %v992_v33 }
  0xdc   :  { %823 = vmatmul.mubr.msk.f32.gmra.mrb[2].mxu0 %vm337_vm0, %v282_v46 }
  0xdd   :  { %438 = vmatprep.mubr.f32.mxu0 %v992_v33 }
  0xe0   :  { %824 = vmatmul.mubr.msk.f32.gmra.mrb[4].mxu0 %vm337_vm0, %v283_v47 }
  0xe1   :  { %444 = vmatprep.mubr.f32.mxu0 %v992_v33 }
  0xe4   :  { %825 = vmatmul.mubr.msk.f32.gmra.mrb[6].mxu0 %vm337_vm0, %v284_v49 }
  0xe5   :  { %450 = vmatprep.mubr.f32.mxu0 %v992_v33 }
  0xe8   :  { %826 = vmatmul.mubr.msk.f32.gmra.mrb[8].mxu0 %vm337_vm0, %v285_v50 }
  0xe9   :  { %456 = vmatprep.mubr.f32.mxu0 %v992_v33 }
  0xec   :  { %827 = vmatmul.mubr.msk.f32.gmra.mrb[10].mxu0 %vm337_vm0, %v286_v51 }
  0xed   :  { %462 = vmatprep.mubr.f32.mxu0 %v992_v33 }
  0xf0   :  { %828 = vmatmul.mubr.msk.f32.gmra.mrb[12].mxu0 %vm337_vm0, %v287_v52 }
  0xf1   :  { %468 = vmatprep.mubr.f32.mxu0 %v992_v33 }
  0xf4   :  { %829 = vmatmul.mubr.msk.f32.gmra.mrb[14].mxu0 %vm337_vm0, %v288_v53 }
  0xf5   :  { %778 = vmatprep.mubr.f32.mxu0 %v992_v33 }
 0x1ab   :  { %v428_v54 = vpop.f32.mrb[0].mxu0 }
 0x1ac   :  { %v430_v57 = vpop.f32.mrb[1].mxu0  ;;  %v429_v61 = vadd.f32 %v428_v54, %v300_v60 }
 0x1ad   :  { %v431_v63 = vadd.f32 %v430_v57, %v300_v60 }
 0x1ae   :  { %v475_v4 = vmax.f32 %v429_v61, 0.0 }
 0x1af   :  { %v434_v0 = vpop.f32.mrb[2].mxu0  ;;  %v476_v6 = vmax.f32 %v431_v63, 0.0  ;;  %v492_v63 = vld [vmem:[%s1312_s5 + $0x8] sm:$0xff] }
 0x1b0   :  { %v435_v1 = vadd.f32 %v434_v0, %v305_v62  ;;  %v436_v2 = vpop.f32.mrb[3].mxu0  ;;  %v493_v0 = vld [vmem:[%s1312_s5 + $0x10] sm:$0xff] }
 0x1b1   :  { %v437_v3 = vadd.f32 %v436_v2, %v305_v62  ;;  %v491_v62 = vld [vmem:[%s1312_s5] sm:$0xff] }
 0x1b2   :  { %v477_v5 = vmax.f32 %v435_v1, 0.0  ;;  %v494_v1 = vld [vmem:[%s1312_s5 + $0x18] sm:$0xff]  ;;  %v495_v2 = vld [vmem:[%s1312_s5 + $0x20] sm:$0xff] }
 0x1b3   :  { %v478_v7 = vmax.f32 %v437_v3, 0.0  ;;  %v440_v8 = vpop.f32.mrb[4].mxu0  ;;  %v496_v3 = vld [vmem:[%s1312_s5 + $0x28] sm:$0xff] }
 0x1b4   :  { %v442_v9 = vpop.f32.mrb[5].mxu0  ;;  %v857_v10 = vpack.c.bf16 %v477_v5, %v475_v4  ;;  %v441_v14 = vadd.f32 %v440_v8, %v310_v12  ;;  %v497_v4 = vld [vmem:[%s1312_s5 + $0x30] sm:$0xff]  ;;  %v498_v5 = vld [vmem:[%s1312_s5 + $0x38] sm:$0xff] }
 0x1b5   :  { %v855_v13 = vpack.c.bf16 %v478_v7, %v476_v6  ;;  %v443_v42 = vadd.f32 %v442_v9, %v310_v12  ;;  %v510_v6 = vpop.permute.xlu0 %509  ;;  %v515_v12 = vpop.permute.xlu1 %514 }
 0x1b6   :  { %v479_v19 = vmax.f32 %v441_v14, 0.0 }
 0x1b7   :  { %v446_v16 = vpop.f32.mrb[6].mxu0  ;;  %856 = vmatprep.subr.bf16.mxu1 %v855_v13  ;;  %v480_v21 = vmax.f32 %v443_v42, 0.0 }
 0x1b8   :  { %v447_v11 = vadd.f32 %v446_v16, %v315_v15  ;;  %v448_v17 = vpop.f32.mrb[7].mxu0  ;;  %858 = vmatpush1.bf16.msra.mxu1 %v857_v10 }
 0x1b9   :  { %v449_v18 = vadd.f32 %v448_v17, %v315_v15 }
 0x1ba   :  { %v481_v20 = vmax.f32 %v447_v11, 0.0 }
 0x1bb   :  { %v482_v22 = vmax.f32 %v449_v18, 0.0  ;;  %v452_v23 = vpop.f32.mrb[8].mxu0 }
 0x1bc   :  { %v861_v24 = vpack.c.bf16 %v481_v20, %v479_v19  ;;  %v454_v25 = vpop.f32.mrb[9].mxu0  ;;  %v453_v28 = vadd.f32 %v452_v23, %v320_v26  ;;  %v525_v19 = vpop.permute.xlu1 %524 }
 0x1bd   :  { %v859_v27 = vpack.c.bf16 %v482_v22, %v480_v21  ;;  %v455_v30 = vadd.f32 %v454_v25, %v320_v26 }
 0x1be   :  { %v483_v32 = vmax.f32 %v453_v28, 0.0 }
 0x1bf   :  { %v458_v48 = vpop.f32.mrb[10].mxu0  ;;  %860 = vmatprep.subr.bf16.mxu1 %v859_v27  ;;  %v484_v35 = vmax.f32 %v455_v30, 0.0 }
 0x1c0   :  { %v459_v31 = vadd.f32 %v458_v48, %v325_v29  ;;  %v460_v55 = vpop.f32.mrb[11].mxu0  ;;  %862 = vmatpush1.bf16.msra.mxu1 %v861_v24 }
 0x1c1   :  { %v461_v58 = vadd.f32 %v460_v55, %v325_v29 }
 0x1c2   :  { %v485_v34 = vmax.f32 %v459_v31, 0.0 }
 0x1c3   :  { %v486_v36 = vmax.f32 %v461_v58, 0.0  ;;  %v464_v56 = vpop.f32.mrb[12].mxu0 }
 0x1c4   :  { %v865_v59 = vpack.c.bf16 %v485_v34, %v483_v32  ;;  %v466_v38 = vpop.f32.mrb[13].mxu0  ;;  %v465_v39 = vadd.f32 %v464_v56, %v330_v41  ;;  %v535_v32 = vpop.permute.xlu1 %534 }
 0x1c5   :  { %v863_v43 = vpack.c.bf16 %v486_v36, %v484_v35  ;;  %v467_v46 = vadd.f32 %v466_v38, %v330_v41 }
 0x1c6   :  { %v487_v52 = vmax.f32 %v465_v39, 0.0 }
 0x1c7   :  { %v470_v47 = vpop.f32.mrb[14].mxu0  ;;  %864 = vmatprep.subr.bf16.mxu1 %v863_v43  ;;  %v488_v54 = vmax.f32 %v467_v46, 0.0 }
 0x1c8   :  { %v471_v49 = vadd.f32 %v470_v47, %v335_v45  ;;  %v472_v50 = vpop.f32.mrb[15].mxu0  ;;  %866 = vmatpush1.bf16.msra.mxu1 %v865_v59 }
 0x1c9   :  { %v473_v51 = vadd.f32 %v472_v50, %v335_v45 }
 0x1ca   :  { %v489_v53 = vmax.f32 %v471_v49, 0.0 }
 0x1cb   :  { %v490_v57 = vmax.f32 %v473_v51, 0.0 }
 0x1cc   :  { %v869_v60 = vpack.c.bf16 %v489_v53, %v487_v52  ;;  %v545_v52 = vpop.permute.xlu1 %544 }
 0x1cd   :  { %v867_v61 = vpack.c.bf16 %v490_v57, %v488_v54 }
 0x1cf   :  { %868 = vmatprep.subr.bf16.mxu1 %v867_v61 }
 0x1d0   :  { %870 = vmatpush1.bf16.msra.mxu1 %v869_v60 }
 0x1d3   :  { %830 = vmatmul.mubr.msk.f32.vlgmr.msra.gmra.mrb[0].mxu1 %vm337_vm0, %v491_v62 }
 0x1d4   :  { %641 = vmatprep.mubr.f32.mxu1 %v992_v33 }
 0x1d7   :  { %831 = vmatmul.mubr.msk.f32.gmra.mrb[2].mxu1 %vm337_vm0, %v492_v63 }
 0x1d8   :  { %647 = vmatprep.mubr.f32.mxu1 %v992_v33 }
 0x1db   :  { %832 = vmatmul.mubr.msk.f32.gmra.mrb[4].mxu1 %vm337_vm0, %v493_v0 }
 0x1dc   :  { %653 = vmatprep.mubr.f32.mxu1 %v992_v33 }
 0x1df   :  { %833 = vmatmul.mubr.msk.f32.gmra.mrb[6].mxu1 %vm337_vm0, %v494_v1 }
 0x1e0   :  { %659 = vmatprep.mubr.f32.mxu1 %v992_v33 }
 0x1e3   :  { %834 = vmatmul.mubr.msk.f32.gmra.mrb[8].mxu1 %vm337_vm0, %v495_v2 }
 0x1e4   :  { %665 = vmatprep.mubr.f32.mxu1 %v992_v33 }
 0x1e7   :  { %835 = vmatmul.mubr.msk.f32.gmra.mrb[10].mxu1 %vm337_vm0, %v496_v3 }
 0x1e8   :  { %671 = vmatprep.mubr.f32.mxu1 %v992_v33 }
 0x1eb   :  { %836 = vmatmul.mubr.msk.f32.gmra.mrb[12].mxu1 %vm337_vm0, %v497_v4 }
 0x1ec   :  { %677 = vmatprep.mubr.f32.mxu1 %v992_v33  ;;  %v520_v33 = vpop.permute.xlu0 %519 }
 0x1ef   :  { %837 = vmatmul.mubr.msk.f32.gmra.mrb[14].mxu1 %vm337_vm0, %v498_v5 }
 0x1f0   :  { %v530_v26 = vpop.permute.xlu0 %529 }
 0x1f4   :  { %v540_v41 = vpop.permute.xlu0 %539 }
 0x2a6   :  { %v637_v7 = vpop.f32.mrb[0].mxu1 }
 0x2a7   :  { %v638_v8 = vadd.f32 %v637_v7, %v510_v6  ;;  %v639_v9 = vpop.f32.mrb[1].mxu1 }
 0x2a8   :  { %v640_v10 = vadd.f32 %v639_v9, %v510_v6  ;;  %v700_v9 = vld [vmem:[%s1314_s7] sm:$0x1]  ;;  %s966_s7 = scalar_lea.vmem %s815_s11, 32 }
 0x2a9   :  { %934 = vtanh.f32 %v638_v8  ;;  %p967_p0 = scmp.ne.s32.totalorder %s815_s11, %s966_s7  ;;  %p972_p2 = scmp.lt.s32.totalorder %s966_s7, %s966_s7 }
 0x2aa   :  { %v643_v13 = vpop.f32.mrb[2].mxu1  ;;  %936 = vtanh.f32 %v640_v10  ;;  %v993_v10 = vmov 1966171168  }
 0x2ab   :  { %v644_v14 = vadd.f32 %v643_v13, %v515_v12  ;;  %v645_v15 = vpop.f32.mrb[3].mxu1  ;;  %v705_v13 = vpop.permute.xlu0 %704  ;;  %p973_p3 = por %p972_p2, %p971_p1 }
 0x2ac   :  { %v646_v42 = vadd.f32 %v645_v15, %v515_v12  ;;  %v789_v12 = vunpack.c.l.s4 %v993_v10  ;;  %v710_v15 = vrot.slane %v705_v13, %v1153_v44 }
 0x2ad   :  { %938 = vtanh.f32 %v644_v14  ;;  %p974_p4 = pnand %p973_p3, %p967_p0 }
 0x2ae   :  { %940 = vtanh.f32 %v646_v42  ;;  %v649_v16 = vpop.f32.mrb[4].mxu1  ;;  %v790_v14 = vunpack.c.0.s8 %v789_v12 }
 0x2af   :  { %v650_v11 = vadd.f32 %v649_v16, %v520_v33  ;;  %v651_v17 = vpop.f32.mrb[5].mxu1 }
 0x2b0   :  { %v652_v18 = vadd.f32 %v651_v17, %v520_v33  ;;  %v793_v17 = vsub.s32 %v790_v14, %v1147_v40 }
 0x2b1   :  { %942 = vtanh.f32 %v650_v11 }
 0x2b2   :  { %v655_v20 = vpop.f32.mrb[6].mxu1  ;;  %944 = vtanh.f32 %v652_v18 }
 0x2b3   :  { %v656_v21 = vadd.f32 %v655_v20, %v525_v19  ;;  %v657_v22 = vpop.f32.mrb[7].mxu1  ;;  %v935_v24 = vpop.eup %934 }
 0x2b4   :  { %v658_v23 = vadd.f32 %v657_v22, %v525_v19  ;;  %v937_v25 = vpop.eup %936 }
 0x2b5   :  { %946 = vtanh.f32 %v656_v21 }
 0x2b6   :  { %948 = vtanh.f32 %v658_v23  ;;  %v661_v27 = vpop.f32.mrb[8].mxu1 }
 0x2b7   :  { %v939_v28 = vpop.eup %938  ;;  %v662_v29 = vadd.f32 %v661_v27, %v530_v26  ;;  %v663_v30 = vpop.f32.mrb[9].mxu1 }
 0x2b8   :  { %v941_v48 = vpop.eup %940  ;;  %v664_v31 = vadd.f32 %v663_v30, %v530_v26  ;;  %v873_v55 = vpack.c.bf16 %v939_v28, %v935_v24 }
 0x2b9   :  { %v871_v58 = vpack.c.bf16 %v941_v48, %v937_v25  ;;  %950 = vtanh.f32 %v662_v29 }
 0x2ba   :  { %v667_v34 = vpop.f32.mrb[10].mxu1  ;;  %952 = vtanh.f32 %v664_v31 }
 0x2bb   :  { %v668_v35 = vadd.f32 %v667_v34, %v535_v32  ;;  %v669_v36 = vpop.f32.mrb[11].mxu1  ;;  %872 = vmatprep.subr.bf16.mxu0 %v871_v58  ;;  %v943_v59 = vpop.eup %942 }
 0x2bc   :  { %v670_v56 = vadd.f32 %v669_v36, %v535_v32  ;;  %874 = vmatpush1.bf16.msra.mxu0 %v873_v55  ;;  %v945_v38 = vpop.eup %944 }
 0x2bd   :  { %954 = vtanh.f32 %v668_v35 }
 0x2be   :  { %956 = vtanh.f32 %v670_v56  ;;  %v673_v43 = vpop.f32.mrb[12].mxu1 }
 0x2bf   :  { %v947_v39 = vpop.eup %946  ;;  %v674_v45 = vadd.f32 %v673_v43, %v540_v41  ;;  %v675_v46 = vpop.f32.mrb[13].mxu1 }
 0x2c0   :  { %v949_v47 = vpop.eup %948  ;;  %v676_v49 = vadd.f32 %v675_v46, %v540_v41  ;;  %v877_v50 = vpack.c.bf16 %v947_v39, %v943_v59 }
 0x2c1   :  { %v875_v51 = vpack.c.bf16 %v949_v47, %v945_v38  ;;  %958 = vtanh.f32 %v674_v45 }
 0x2c2   :  { %v679_v53 = vpop.f32.mrb[14].mxu1  ;;  %960 = vtanh.f32 %v676_v49 }
 0x2c3   :  { %v680_v54 = vadd.f32 %v679_v53, %v545_v52  ;;  %v681_v57 = vpop.f32.mrb[15].mxu1  ;;  %876 = vmatprep.subr.bf16.mxu0 %v875_v51  ;;  %v951_v61 = vpop.eup %950 }
 0x2c4   :  { %v682_v60 = vadd.f32 %v681_v57, %v545_v52  ;;  %878 = vmatpush1.bf16.msra.mxu0 %v877_v50  ;;  %v953_v62 = vpop.eup %952 }
 0x2c5   :  { %962 = vtanh.f32 %v680_v54 }
 0x2c6   :  { %964 = vtanh.f32 %v682_v60 }
 0x2c7   :  { %v955_v63 = vpop.eup %954 }
 0x2c8   :  { %v957_v0 = vpop.eup %956  ;;  %v881_v1 = vpack.c.bf16 %v955_v63, %v951_v61 }
 0x2c9   :  { %v879_v2 = vpack.c.bf16 %v957_v0, %v953_v62 }
 0x2cb   :  { %880 = vmatprep.subr.bf16.mxu0 %v879_v2  ;;  %v959_v3 = vpop.eup %958 }
 0x2cc   :  { %882 = vmatpush1.bf16.msra.mxu0 %v881_v1  ;;  %v961_v4 = vpop.eup %960 }
 0x2cf   :  { %v963_v5 = vpop.eup %962 }
 0x2d0   :  { %v965_v6 = vpop.eup %964  ;;  %v885_v7 = vpack.c.bf16 %v963_v5, %v959_v3 }
 0x2d1   :  { %v883_v8 = vpack.c.bf16 %v965_v6, %v961_v4 }
 0x2d3   :  { %884 = vmatprep.subr.bf16.mxu0 %v883_v8 }
 0x2d4   :  { %886 = vmatpush1.bf16.msra.mxu0 %v885_v7 }
 0x2d7   :  { %838 = vmatmul.mubr.msk.f32.vlgmr.msra.gmra.mrb[16].mxu0 %vm337_vm0, %v700_v9 }
 0x3aa   :  { %v780_v42 = vpop.f32.mrb[16].mxu0 }
 0x3ab   :  { %v781_v33 = vadd.f32 %v780_v42, %v710_v15  ;;  %v782_v16 = vpop.f32.mrb[17].mxu0 }
 0x3ac   :  { %v783_v11 = vadd.f32 %v782_v16, %v710_v15 }
 0x3ae   :  { %v787_v18 = vcombine.low %v781_v33, %v783_v11 }
 0x3b0   :  { %v794_v19 = vrot.slane %v787_v18, %v793_v17 }
 0x3b2   :  { %v801_v20 = vrot.slane %v794_v19, %v793_v17 }
 0x3b4   :  { %807 = vst.msk [vmem:[#allocation3] sm:$0x3] %vm805_vm1, %v801_v20 }
 0x3b5   :  { %977 = shalt.err (!%p974_p4)
}
 0x3b6   :  { %s978_s14 = scalar_lea.hbm %s1316_s9, 32 }
 0x3b7   :  { %p979_p5 = scmp.ne.s32.totalorder %s1316_s9, %s978_s14  ;;  %p982_p6 = scmp.lt.u32.totalorder %s978_s14, %s1316_s9 }
 0x3b9   :  { %p984_p7 = pnand %p982_p6, %p979_p5 }
 0x3bb   :  { %987 = shalt.err (!%p984_p7)
}
 0x3bc   :  { %817 = dma.vmem_to_hbm [thread:$0]  %s815_s11, 32, %s1316_s9, [#allocation4]  }
 0x3bd   :  { %988 = dma.done.wait [#allocation4], 32  }
 0x3be   :  { %989 = vsyncadd [#allocation4], 4294967264 }
 0x3bf   :  { %821 = vsyncpa [#allocation4], 1 }

</bundles_post_ra>
